<compile_context>
chip_gen: v7x
topology: tpu7x:2x2x1
jax: 0.10.0
libtpu: 0.0.40
codegen_flags: <defaults>
</compile_context>

<pallas_src>
import functools

import jax
import jax.numpy as jnp
from jax.experimental import pallas as pl
from jax.experimental.pallas import tpu as pltpu


def _round_up(x, m):
    return (x + m - 1) // m * m


def _cdiv(a, b):
    return (a + b - 1) // b


def _device_kind():
    try:
        return jax.devices()[0].device_kind.lower()
    except Exception:
        return ""


def _tile_budget_bytes(kind):
    # Per-noise-tile byte budget (x2 in flight with double buffering). Must stay
    # inside scoped VMEM: 16 MiB default on v5e, 32 MiB on v6e/v7x (64 MiB phys on v7x).
    if "v5 lite" in kind or "v5lite" in kind or "v5e" in kind:
        return 5 * 1024 * 1024
    if "v6" in kind or "trillium" in kind:
        return 10 * 1024 * 1024
    if "v7" in kind:
        return 12 * 1024 * 1024
    return 6 * 1024 * 1024      # unknown chip: conservative


def _num_tensorcores(kind):
    # v7x exposes 2 TensorCores per device; v4/v5p megacore also expose 2.
    if "v7" in kind or "v4" in kind:
        return 2
    if "v5" in kind and "lite" not in kind and "v5e" not in kind:
        return 2                # v5p
    return 1


def _update_kernel(costs_ref, noise_ref, acc_out_ref, m_out_ref, eta_out_ref,
                   acc_ref, m_ref, eta_ref, *,
                   neg_inv_lam, tile_k, part_rows, num_rows, needs_mask):
    # costs_ref: (1, tk) f32 (+inf padded)   noise_ref: (tk, n) original dtype
    # outputs (per partition): acc (1, n) f32, m (1, 1) f32, eta (1, 1) f32
    # scratch: acc_ref (1, n) f32, m_ref (1, 1) f32, eta_ref (1, 1) f32
    i = pl.program_id(1)

    @pl.when(i == 0)
    def _init():
        m_ref[...] = jnp.full_like(m_ref, jnp.inf)
        eta_ref[...] = jnp.zeros_like(eta_ref)
        acc_ref[...] = jnp.zeros_like(acc_ref)

    c = costs_ref[...]                                          # (1, tk)
    m_prev = m_ref[...]                                         # (1, 1)
    m_new = jnp.minimum(m_prev, jnp.min(c, axis=-1, keepdims=True))
    # Rescale previously accumulated partials when the running min improves.
    # Step 0: m_prev = +inf -> alpha = exp(-inf) = 0 (accumulators are zero).
    alpha = jnp.exp(neg_inv_lam * (m_prev - m_new))             # (1, 1) in [0, 1]
    # Unnormalized weights for this tile; +inf-padded costs -> exactly 0.
    e = jnp.exp(neg_inv_lam * (c - m_new))                      # (1, tk)

    eta_ref[...] = alpha * eta_ref[...] + jnp.sum(e, axis=-1, keepdims=True)

    nt = noise_ref[...]                                         # (tk, n), NO f32 upcast
    if needs_mask:
        # Ragged last tile: rows past k hold stale VMEM (possibly NaN/Inf) ->
        # zero them so a 0-weight row cannot poison the accumulator.
        row0 = pl.program_id(0) * part_rows + i * tile_k
        rows = jax.lax.broadcasted_iota(jnp.int32, (tile_k, 1), 0) + row0
        nt = jnp.where(rows < num_rows, nt, jnp.zeros_like(nt))

    prec = (jax.lax.Precision.HIGHEST if nt.dtype == jnp.float32
            else jax.lax.Precision.DEFAULT)
    acc_ref[...] = alpha * acc_ref[...] + jnp.dot(
        e.astype(nt.dtype), nt, precision=prec,
        preferred_element_type=jnp.float32)                     # (1, n) MXU
    m_ref[...] = m_new

    @pl.when(i == pl.num_programs(1) - 1)
    def _finalize():
        acc_out_ref[...] = acc_ref[...]
        m_out_ref[...] = m_ref[...]
        eta_out_ref[...] = eta_ref[...]


def mppi_update(costs, noise, lam, *, tile_k=None):
    """costs: [k], noise: [k, tau, aDim, 1] -> (weighted_noise [tau, aDim, 1] f32, eta f32 scalar)."""
    k = costs.shape[0]
    tau, a_dim = noise.shape[1], noise.shape[2]
    n = tau * a_dim
    n_vmem = _round_up(n, 128)                 # VMEM lane-pads internally; HBM traffic stays at n
    itemsize = jnp.dtype(noise.dtype).itemsize
    kind = _device_kind()

    # ---- choose the k-tile -------------------------------------------------
    if tile_k is None:
        tk_max = max(128, (_tile_budget_bytes(kind) // (n_vmem * itemsize)) // 128 * 128)
    else:
        tk_max = max(8, int(tile_k))
    if tk_max >= k:
        tk = k                                 # single full-extent block (exempt from (8,128) rule)
        num_tiles = 1
    else:
        num_tiles = _cdiv(k, tk_max)
        tk = _round_up(_cdiv(k, num_tiles), 128)   # even split, 128-aligned, <= k
        num_tiles = _cdiv(k, tk)

    # ---- partition the tiles across TensorCores (v7x / megacore) ------------
    num_part = 2 if (_num_tensorcores(kind) >= 2 and num_tiles >= 2) else 1
    t_part = _cdiv(num_tiles, num_part)
    last_block = num_tiles - 1                 # phantom tiles clamp to the last real block
    part_rows = t_part * tk
    k_cost = num_part * t_part * tk
    needs_mask = (k % tk) != 0

    # Pad ONLY the tiny costs vector with +inf (zero weight for padded rows).
    costs2d = costs.astype(jnp.float32).reshape(1, k)
    if k_cost > k:
        costs2d = jnp.pad(costs2d, ((0, 0), (0, k_cost - k)), constant_values=jnp.inf)

    # Noise stays unpadded in HBM, original dtype; (tk, n) row blocks are contiguous.
    noise2d = noise.reshape(k, n)

    noise_tile_vmem = tk * n_vmem * itemsize
    vmem_limit = int(min(2 * noise_tile_vmem + 2 * tk * 4 + 8 * n_vmem * 4 + (2 << 20),
                         56 * 1024 * 1024))

    kernel = functools.partial(
        _update_kernel, neg_inv_lam=float(-1.0 / lam), tile_k=tk,
        part_rows=part_rows, num_rows=k, needs_mask=needs_mask)

    acc_p, m_p, eta_p = pl.pallas_call(
        kernel,
        out_shape=(
            jax.ShapeDtypeStruct((num_part, 1, n), jnp.float32),
            jax.ShapeDtypeStruct((num_part, 1, 1), jnp.float32),
            jax.ShapeDtypeStruct((num_part, 1, 1), jnp.float32),
        ),
        grid_spec=pltpu.PrefetchScalarGridSpec(
            num_scalar_prefetch=0,
            grid=(num_part, t_part),
            in_specs=[
                pl.BlockSpec((1, tk), lambda c, i: (0, c * t_part + i)),
                pl.BlockSpec((tk, n),
                             lambda c, i: (jnp.minimum(c * t_part + i, last_block), 0)),
            ],
            out_specs=(
                pl.BlockSpec((None, 1, n), lambda c, i: (c, 0, 0)),
                pl.BlockSpec((None, 1, 1), lambda c, i: (c, 0, 0)),
                pl.BlockSpec((None, 1, 1), lambda c, i: (c, 0, 0)),
            ),
            scratch_shapes=[
                pltpu.VMEM((1, n), jnp.float32),   # running weighted-noise accumulator
                pltpu.VMEM((1, 1), jnp.float32),   # running min (beta so far)
                pltpu.VMEM((1, 1), jnp.float32),   # running eta
            ],
        ),
        compiler_params=pltpu.CompilerParams(
            dimension_semantics=("parallel", "arbitrary"),
            vmem_limit_bytes=vmem_limit,
        ),
        cost_estimate=pl.CostEstimate(
            flops=2 * k * n,
            transcendentals=k,
            bytes_accessed=k * n * itemsize + k_cost * 4 + num_part * (n + 2) * 4,
        ),
    )(costs2d, noise2d)

    # Tiny host-side epilogue: merge the per-partition online partials
    # (log-sum-exp-style) and fold in the normalization.
    m_p = m_p.reshape(num_part)
    eta_p = eta_p.reshape(num_part)
    acc_p = acc_p.reshape(num_part, n)
    beta = jnp.min(m_p)
    scale = jnp.exp((-1.0 / lam) * (m_p - beta))
    eta = jnp.sum(scale * eta_p)
    weighted = jnp.sum(scale[:, None] * acc_p, axis=0) / eta
    return weighted.reshape(tau, a_dim, 1), eta


def _reference(costs, noise, lam):
    beta = jnp.min(costs)
    e = jnp.exp((-1.0 / lam) * (costs - beta))
    eta = jnp.sum(e)
    w = e / eta
    return jnp.sum(w[:, None, None, None] * noise, axis=0), eta


if __name__ == "__main__":
    lam = 0.5
    k1, k2, k3, k4 = jax.random.split(jax.random.PRNGKey(0), 4)

    # Case 1: tiny shapes consistent with the module (single tile, single partition).
    k, tau, a_dim = 8, 8, 4
    costs = jax.random.uniform(k1, (k,), dtype=jnp.float32) * 10.0
    noise = jax.random.normal(k2, (k, tau, a_dim, 1), dtype=jnp.float32)
    wn, eta = mppi_update(costs, noise, lam)
    jax.block_until_ready((wn, eta))
    ref_wn, ref_eta = _reference(costs, noise, lam)
    assert wn.shape == (tau, a_dim, 1)
    assert jnp.allclose(wn, ref_wn, atol=1e-4, rtol=1e-4)
    assert jnp.allclose(eta, ref_eta, atol=1e-4, rtol=1e-4)

    # Case 2: larger k with a forced small k-tile -> multi-step online
    # reduction, ragged last-tile masking and (on 2-TC chips) the 2-way
    # partial-reduction + merge path.
    k, tau, a_dim = 300, 10, 3
    costs = jax.random.uniform(k3, (k,), dtype=jnp.float32) * 10.0
    noise = jax.random.normal(k4, (k, tau, a_dim, 1), dtype=jnp.float32)
    wn, eta = mppi_update(costs, noise, lam, tile_k=128)
    jax.block_until_ready((wn, eta))
    ref_wn, ref_eta = _reference(costs, noise, lam)
    assert wn.shape == (tau, a_dim, 1)
    assert jnp.allclose(wn, ref_wn, atol=1e-4, rtol=1e-4)
    assert jnp.allclose(eta, ref_eta, atol=1e-4, rtol=1e-4)

    print("KERNEL_OK")
</pallas_src>

<mosaic_0001>
module attributes {stable_mosaic.version = 11 : i64} {
  func.func @_update_kernel(%arg0: i32, %arg1: i32, %arg2: memref<1x8xf32, #tpu.memory_space<vmem>>, %arg3: memref<8x32xf32, #tpu.memory_space<vmem>>, %arg4: memref<1x1x32xf32, #tpu.memory_space<vmem>>, %arg5: memref<1x1x1xf32, #tpu.memory_space<vmem>>, %arg6: memref<1x1x1xf32, #tpu.memory_space<vmem>>, %arg7: memref<1x32xf32, #tpu.memory_space<vmem>>, %arg8: memref<1x1xf32, #tpu.memory_space<vmem>>, %arg9: memref<1x1xf32, #tpu.memory_space<vmem>>) attributes {dimension_semantics = [#tpu.dimension_semantics<parallel>, #tpu.dimension_semantics<arbitrary>], iteration_bounds = array<i64: 1, 1>, scalar_prefetch = 0 : i64, scratch_operands = 3 : i64, tpu.core_type = #tpu.core_type<tc>, window_params = [{transform_indices = @transform_0, window_bounds = array<i64: 1, 8>}, {transform_indices = @transform_1, window_bounds = array<i64: 8, 32>}, {transform_indices = @transform_2, window_bounds = array<i64: 1, 1, 32>}, {transform_indices = @transform_3, window_bounds = array<i64: 1, 1, 1>}, {transform_indices = @transform_4, window_bounds = array<i64: 1, 1, 1>}]} {
    %c0_i32 = arith.constant 0 : i32
    %0 = arith.cmpi eq, %arg1, %c0_i32 : i32
    %1 = arith.extui %0 : i1 to i32
    %c0_i32_0 = arith.constant 0 : i32
    %2 = arith.cmpi ne, %1, %c0_i32_0 : i32
    scf.if %2 {
      %cst_22 = arith.constant 0x7F800000 : f32
      %34 = vector.broadcast %cst_22 : f32 to vector<1x1xf32>
      %c0_23 = arith.constant 0 : index
      %c0_24 = arith.constant 0 : index
      %35 = vector.load %arg8[%c0_23, %c0_24] : memref<1x1xf32, #tpu.memory_space<vmem>>, vector<1x1xf32>
      tpu.vector_store %arg8[%c0_23, %c0_24], %34 {strides = array<i32>} : memref<1x1xf32, #tpu.memory_space<vmem>>, vector<1x1xf32>,
      %cst_25 = arith.constant 0.000000e+00 : f32
      %36 = vector.broadcast %cst_25 : f32 to vector<1x1xf32>
      %c0_26 = arith.constant 0 : index
      %c0_27 = arith.constant 0 : index
      %37 = vector.load %arg9[%c0_26, %c0_27] : memref<1x1xf32, #tpu.memory_space<vmem>>, vector<1x1xf32>
      tpu.vector_store %arg9[%c0_26, %c0_27], %36 {strides = array<i32>} : memref<1x1xf32, #tpu.memory_space<vmem>>, vector<1x1xf32>,
      %cst_28 = arith.constant 0.000000e+00 : f32
      %38 = vector.broadcast %cst_28 : f32 to vector<1x32xf32>
      %c0_29 = arith.constant 0 : index
      %c0_30 = arith.constant 0 : index
      %39 = vector.load %arg7[%c0_29, %c0_30] : memref<1x32xf32, #tpu.memory_space<vmem>>, vector<1x32xf32>
      tpu.vector_store %arg7[%c0_29, %c0_30], %38 {strides = array<i32>} : memref<1x32xf32, #tpu.memory_space<vmem>>, vector<1x32xf32>,
    } else {
    }
    %c0 = arith.constant 0 : index
    %c0_1 = arith.constant 0 : index
    %3 = vector.load %arg2[%c0, %c0_1] : memref<1x8xf32, #tpu.memory_space<vmem>>, vector<1x8xf32>
    %c0_2 = arith.constant 0 : index
    %c0_3 = arith.constant 0 : index
    %4 = vector.load %arg8[%c0_2, %c0_3] : memref<1x1xf32, #tpu.memory_space<vmem>>, vector<1x1xf32>
    %cst = arith.constant dense<0x7F800000> : vector<1xf32>
    %5 = vector.multi_reduction <minimumf>, %3, %cst [1] : vector<1x8xf32> to vector<1xf32>
    %6 = vector.shape_cast %5 : vector<1xf32> to vector<1x1xf32>
    %7 = arith.minimumf %4, %6 : vector<1x1xf32>
    %8 = arith.subf %4, %7 : vector<1x1xf32>
    %cst_4 = arith.constant -2.000000e+00 : f32
    %9 = vector.broadcast %cst_4 : f32 to vector<1x1xf32>
    %10 = arith.mulf %9, %8 : vector<1x1xf32>
    %11 = math.exp %10 : vector<1x1xf32>
    %12 = vector.broadcast %7 : vector<1x1xf32> to vector<1x8xf32>
    %13 = arith.subf %3, %12 : vector<1x8xf32>
    %cst_5 = arith.constant -2.000000e+00 : f32
    %14 = vector.broadcast %cst_5 : f32 to vector<1x8xf32>
    %15 = arith.mulf %14, %13 : vector<1x8xf32>
    %16 = math.exp %15 : vector<1x8xf32>
    %c0_6 = arith.constant 0 : index
    %c0_7 = arith.constant 0 : index
    %17 = vector.load %arg9[%c0_6, %c0_7] : memref<1x1xf32, #tpu.memory_space<vmem>>, vector<1x1xf32>
    %18 = arith.mulf %11, %17 : vector<1x1xf32>
    %cst_8 = arith.constant dense<0.000000e+00> : vector<1xf32>
    %19 = vector.multi_reduction <add>, %16, %cst_8 [1] : vector<1x8xf32> to vector<1xf32>
    %20 = vector.shape_cast %19 : vector<1xf32> to vector<1x1xf32>
    %21 = arith.addf %18, %20 : vector<1x1xf32>
    %c0_9 = arith.constant 0 : index
    %c0_10 = arith.constant 0 : index
    %22 = vector.load %arg9[%c0_9, %c0_10] : memref<1x1xf32, #tpu.memory_space<vmem>>, vector<1x1xf32>
    tpu.vector_store %arg9[%c0_9, %c0_10], %21 {strides = array<i32>} : memref<1x1xf32, #tpu.memory_space<vmem>>, vector<1x1xf32>,
    %c0_11 = arith.constant 0 : index
    %c0_12 = arith.constant 0 : index
    %23 = vector.load %arg3[%c0_11, %c0_12] : memref<8x32xf32, #tpu.memory_space<vmem>>, vector<8x32xf32>
    %c0_13 = arith.constant 0 : index
    %c0_14 = arith.constant 0 : index
    %24 = vector.load %arg7[%c0_13, %c0_14] : memref<1x32xf32, #tpu.memory_space<vmem>>, vector<1x32xf32>
    %25 = vector.broadcast %11 : vector<1x1xf32> to vector<1x32xf32>
    %26 = arith.mulf %25, %24 : vector<1x32xf32>
    %cst_15 = arith.constant dense<0.000000e+00> : vector<1x32xf32>
    %27 = tpu.matmul %16, %23, %cst_15 {dimension_numbers = #tpu.dot_dimension_numbers<[1], [0], [0], [1], [0, 0, 1, 1], [], []>, precision = #tpu.contract_precision<fp32>} : vector<1x8xf32>, vector<8x32xf32>, vector<1x32xf32> -> vector<1x32xf32>
    %28 = arith.addf %26, %27 : vector<1x32xf32>
    %c0_16 = arith.constant 0 : index
    %c0_17 = arith.constant 0 : index
    %29 = vector.load %arg7[%c0_16, %c0_17] : memref<1x32xf32, #tpu.memory_space<vmem>>, vector<1x32xf32>
    tpu.vector_store %arg7[%c0_16, %c0_17], %28 {strides = array<i32>} : memref<1x32xf32, #tpu.memory_space<vmem>>, vector<1x32xf32>,
    %c0_18 = arith.constant 0 : index
    %c0_19 = arith.constant 0 : index
    %30 = vector.load %arg8[%c0_18, %c0_19] : memref<1x1xf32, #tpu.memory_space<vmem>>, vector<1x1xf32>
    tpu.vector_store %arg8[%c0_18, %c0_19], %7 {strides = array<i32>} : memref<1x1xf32, #tpu.memory_space<vmem>>, vector<1x1xf32>,
    %c0_i32_20 = arith.constant 0 : i32
    %31 = arith.cmpi eq, %arg1, %c0_i32_20 : i32
    %32 = arith.extui %31 : i1 to i32
    %c0_i32_21 = arith.constant 0 : i32
    %33 = arith.cmpi ne, %32, %c0_i32_21 : i32
    scf.if %33 {
      %c0_22 = arith.constant 0 : index
      %c0_23 = arith.constant 0 : index
      %34 = vector.load %arg7[%c0_22, %c0_23] : memref<1x32xf32, #tpu.memory_space<vmem>>, vector<1x32xf32>
      %c0_24 = arith.constant 0 : index
      %c0_25 = arith.constant 0 : index
      %c0_26 = arith.constant 0 : index
      %35 = vector.load %arg4[%c0_24, %c0_25, %c0_26] : memref<1x1x32xf32, #tpu.memory_space<vmem>>, vector<1x1x32xf32>
      %36 = vector.shape_cast %35 : vector<1x1x32xf32> to vector<1x32xf32>
      %37 = vector.shape_cast %34 : vector<1x32xf32> to vector<1x1x32xf32>
      tpu.vector_store %arg4[%c0_24, %c0_25, %c0_26], %37 {strides = array<i32>} : memref<1x1x32xf32, #tpu.memory_space<vmem>>, vector<1x1x32xf32>,
      %c0_27 = arith.constant 0 : index
      %c0_28 = arith.constant 0 : index
      %38 = vector.load %arg8[%c0_27, %c0_28] : memref<1x1xf32, #tpu.memory_space<vmem>>, vector<1x1xf32>
      %c0_29 = arith.constant 0 : index
      %c0_30 = arith.constant 0 : index
      %c0_31 = arith.constant 0 : index
      %39 = vector.load %arg5[%c0_29, %c0_30, %c0_31] : memref<1x1x1xf32, #tpu.memory_space<vmem>>, vector<1x1x1xf32>
      %40 = vector.shape_cast %39 : vector<1x1x1xf32> to vector<1x1xf32>
      %41 = vector.shape_cast %38 : vector<1x1xf32> to vector<1x1x1xf32>
      tpu.vector_store %arg5[%c0_29, %c0_30, %c0_31], %41 {strides = array<i32>} : memref<1x1x1xf32, #tpu.memory_space<vmem>>, vector<1x1x1xf32>,
      %c0_32 = arith.constant 0 : index
      %c0_33 = arith.constant 0 : index
      %42 = vector.load %arg9[%c0_32, %c0_33] : memref<1x1xf32, #tpu.memory_space<vmem>>, vector<1x1xf32>
      %c0_34 = arith.constant 0 : index
      %c0_35 = arith.constant 0 : index
      %c0_36 = arith.constant 0 : index
      %43 = vector.load %arg6[%c0_34, %c0_35, %c0_36] : memref<1x1x1xf32, #tpu.memory_space<vmem>>, vector<1x1x1xf32>
      %44 = vector.shape_cast %43 : vector<1x1x1xf32> to vector<1x1xf32>
      %45 = vector.shape_cast %42 : vector<1x1xf32> to vector<1x1x1xf32>
      tpu.vector_store %arg6[%c0_34, %c0_35, %c0_36], %45 {strides = array<i32>} : memref<1x1x1xf32, #tpu.memory_space<vmem>>, vector<1x1x1xf32>,
    } else {
    }
    return
  }
  func.func @transform_0(%arg0: i32, %arg1: i32) -> (i32, i32) {
    %c1_i32 = arith.constant 1 : i32
    %0 = arith.muli %arg0, %c1_i32 : i32
    %1 = arith.addi %0, %arg1 : i32
    %c0_i32 = arith.constant 0 : i32
    %c0_i32_0 = arith.constant 0 : i32
    return %c0_i32, %1 : i32, i32
  }
  func.func @transform_1(%arg0: i32, %arg1: i32) -> (i32, i32) {
    %c1_i32 = arith.constant 1 : i32
    %0 = arith.muli %arg0, %c1_i32 : i32
    %1 = arith.addi %0, %arg1 : i32
    %c0_i32 = arith.constant 0 : i32
    %2 = arith.minsi %1, %c0_i32 : i32
    %c0_i32_0 = arith.constant 0 : i32
    %c0_i32_1 = arith.constant 0 : i32
    return %2, %c0_i32_0 : i32, i32
  }
  func.func @transform_2(%arg0: i32, %arg1: i32) -> (i32, i32, i32) {
    %c0_i32 = arith.constant 0 : i32
    %c0_i32_0 = arith.constant 0 : i32
    %c0_i32_1 = arith.constant 0 : i32
    return %arg0, %c0_i32, %c0_i32_0 : i32, i32, i32
  }
  func.func @transform_3(%arg0: i32, %arg1: i32) -> (i32, i32, i32) {
    %c0_i32 = arith.constant 0 : i32
    %c0_i32_0 = arith.constant 0 : i32
    %c0_i32_1 = arith.constant 0 : i32
    return %arg0, %c0_i32, %c0_i32_0 : i32, i32, i32
  }
  func.func @transform_4(%arg0: i32, %arg1: i32) -> (i32, i32, i32) {
    %c0_i32 = arith.constant 0 : i32
    %c0_i32_0 = arith.constant 0 : i32
    %c0_i32_1 = arith.constant 0 : i32
    return %arg0, %c0_i32, %c0_i32_0 : i32, i32, i32
  }
}

</mosaic_0001>

<bundles_post_ra>
// kernel: tpu_custom_call.1
= control target key start
LH: loop header
LB: loop body
LE: loop exit
PB: predicated region body
PF: predicated region fallthrough
CT: control target
= control target key end

     0   :  { %10 = vsyncpa [#allocation6], 0  ;;  %s920_s0 = inlined_call_operand.hbm [shape: f32[1,8], index: 0, kind: input, shape index: {}]   ;;  %s921_s1 = inlined_call_operand.hbm [shape: f32[8,32], index: 1, kind: input, shape index: {}]   ;;  %s922_s2 = inlined_call_operand.hbm [shape: f32[1,1,32], index: 2, kind: output, shape index: {0}]   ;;  %s923_s3 = inlined_call_operand.hbm [shape: f32[1,1,1], index: 3, kind: output, shape index: {1}]   ;;  %s924_s4 = inlined_call_operand.hbm [shape: f32[1,1,1], index: 4, kind: output, shape index: {2}]  }
   0x1   :  { %11 = vsyncpa [#allocation9], 0 }
   0x2   :  { %12 = vsyncpa [#allocation7], 0 }
   0x3   :  { %13 = vsyncpa [#allocation12], 0  ;;  %s788_s15 = smov [#allocation5]   ;;  %s789_s17 = smov [#allocation8]  }
   0x4   :  { %s23_s16 = sshll.u32 %s788_s15, 4  ;;  %s38_s18 = sshll.u32 %s789_s17, 4  ;;  %s24_s16 = int_to_ptr.vmem [resolvable:$true] %s23_s16  ;;  %s39_s18 = int_to_ptr.vmem [resolvable:$true] %s38_s18 }
   0x5   :  { %s670_s21 = scalar_lea.hbm %s920_s0, 16 }
   0x6   :  { %p671_p0 = scmp.ne.s32.totalorder %s920_s0, %s670_s21  ;;  %p674_p1 = scmp.lt.u32.totalorder %s670_s21, %s920_s0 }
   0x8   :  { %p676_p2 = pnand %p674_p1, %p671_p0 }
   0xa   :  { %679 = shalt.err (!%p676_p2)
}
   0xb   :  { %s680_s26 = scalar_lea.vmem %s24_s16, 16  ;;  %s684_s27 = scalar_lea.vmem %s24_s16, 32 }
   0xc   :  { %p681_p3 = scmp.ne.s32.totalorder %s24_s16, %s680_s26  ;;  %p685_p4 = scmp.lt.s32.totalorder %s24_s16, %s24_s16 }
   0xd   :  { %p686_p5 = scmp.lt.s32.totalorder %s684_s27, %s680_s26 }
   0xf   :  { %p687_p6 = por %p686_p5, %p685_p4 }
  0x11   :  { %p688_p7 = pnand %p687_p6, %p681_p3 }
  0x13   :  { %691 = shalt.err (!%p688_p7)
}
  0x14   :  { %26 = dma.hbm_to_vmem [thread:$0]  %s920_s0, 16, %s24_s16, [#allocation6]  }
  0x15   :  { %s692_s6 = scalar_lea.hbm %s921_s1, 128 }
  0x16   :  { %p693_p8 = scmp.ne.s32.totalorder %s921_s1, %s692_s6  ;;  %p696_p9 = scmp.lt.u32.totalorder %s692_s6, %s921_s1 }
  0x18   :  { %p698_p10 = pnand %p696_p9, %p693_p8 }
  0x1a   :  { %701 = shalt.err (!%p698_p10)
}
  0x1b   :  { %s702_s11 = scalar_lea.vmem %s39_s18, 128  ;;  %p707_p12 = scmp.lt.s32.totalorder %s39_s18, %s39_s18 }
  0x1c   :  { %p703_p11 = scmp.ne.s32.totalorder %s39_s18, %s702_s11  ;;  %p708_p13 = scmp.lt.s32.totalorder %s702_s11, %s702_s11 }
  0x1e   :  { %p709_p0 = por %p708_p13, %p707_p12 }
  0x20   :  { %p710_p1 = pnand %p709_p0, %p703_p11 }
  0x22   :  { %713 = shalt.err (!%p710_p1)
}
  0x23   :  { %41 = dma.hbm_to_vmem [thread:$0]  %s921_s1, 128, %s39_s18, [#allocation9]  }
  0x24   :  { %780 = dma.done.wait [#allocation6], 16  }
  0x25   :  { %781 = vsyncadd [#allocation6], 4294967280 }
  0x26   :  { %782 = dma.done.wait [#allocation9], 128  }
  0x27   :  { %783 = vsyncadd [#allocation9], 4294967168  ;;  %vm56_vm0 = vcmask 0   ;;  %v790_v0 = vmov inf   ;;  %vm63_vm1 = vcmask 57344   ;;  %v791_v3 = vmov 0  }
  0x28   :  { %57 = vst.msk [vmem:[#allocation3] sm:$0x1] %vm56_vm0, %v790_v0  ;;  %v61_v1 = vld [vmem:[#allocation5] sm:$0x1]  ;;  %664 = vset.pattern.permute.xlu0 %v791_v3  ;;  %665 = vset.pattern.permute.xlu1 %v791_v3  ;;  %v792_v4 = vmov 0.0   ;;  %v93_v10 = vld [vmem:[#allocation8] sm:$0xff]  ;;  %v77_v16 = vlaneseq }
  0x29   :  { %v64_v2 = vsel %vm63_vm1, %v61_v1, inf  ;;  %630 = vmatprep.subr.mxu1 %v792_v4  ;;  %58 = vst.msk [vmem:[#allocation4] sm:$0x1] %vm56_vm0, %v792_v4  ;;  %625 = vmatprep.subr.mxu0 %v792_v4  ;;  %v110_v11 = vand.u32 4294901760, %v93_v10  ;;  %vm793_vm2 = vmmov 0   ;;  %vm105_vm3 = vcmask 64512  }
  0x2a   :  { %65 = vmin.xlane.f32.xlu0 %v64_v2  ;;  %632 = vmatprep.mubr.msk.f32.mxu1 %vm793_vm2, %v792_v4  ;;  %v860_v17 = vshrl.u32 %v77_v16, 7  ;;  %vm59_vm4 = vcmask 253952   ;;  %s794_s1 = smov [#allocation11]  }
  0x2b   :  { %v187_v12 = vsub.f32 %v93_v10, %v110_v11  ;;  %626 = vmatpush3.msra.mxu0 %v110_v11  ;;  %627 = vmatprep.mubr.msk.f32.mxu0 %vm793_vm2, %v792_v4  ;;  %60 = vst.msk [vmem:[#allocation2] sm:$0x1] %vm59_vm4, %v792_v4  ;;  %s584_s13 = sshll.u32 %s794_s1, 4  ;;  %s585_s13 = int_to_ptr.vmem [resolvable:$true] %s584_s13 }
  0x2c   :  { %635 = vmatprep.subr.mxu0 %v792_v4  ;;  %v79_v18 = vsub.s32 0, %v860_v17  ;;  %s714_s14 = scalar_lea.vmem %s585_s13, 16  ;;  %s718_s15 = scalar_lea.vmem %s585_s13, 32 }
  0x2d   :  { %v188_v13 = vand.u32 4294901760, %v187_v12  ;;  %p715_p2 = scmp.ne.s32.totalorder %s585_s13, %s714_s14  ;;  %p719_p3 = scmp.lt.s32.totalorder %s585_s13, %s585_s13 }
  0x2e   :  { %p720_p4 = scmp.lt.s32.totalorder %s718_s15, %s714_s14 }
  0x2f   :  { %v62_v5 = vld [vmem:[#allocation3] sm:$0x1]  ;;  %v189_v14 = vsub.f32 %v187_v12, %v188_v13 }
  0x30   :  { %p721_p5 = por %p720_p4, %p719_p3 }
  0x31   :  { %v190_v15 = vand.u32 4294901760, %v189_v14 }
  0x32   :  { %p722_p6 = pnand %p721_p5, %p715_p2 }
  0x33   :  { %631 = vmatpush3.msra.mxu1 %v190_v15 }
  0x34   :  { %640 = vmatprep.subr.mxu1 %v792_v4 }
  0xb7   :  { %v66_v6 = vpop.xlane.xlu0 %65 }
  0xb8   :  { %v67_v7 = vmin.f32 %v62_v5, %v66_v6 }
  0xba   :  { %v68_v8 = vsub.f32 %v62_v5, %v67_v7  ;;  %558 = vst.msk [vmem:[#allocation3] sm:$0x1] %vm56_vm0, %v67_v7  ;;  %74 = vperm.xlu0 %664, %v67_v7  }
  0xbc   :  { %v69_v25 = vmul.f32 -2.0, %v68_v8 }
  0xbe   :  { %v70_v29 = vmul.f32 1.442695, %v69_v25 }
  0xc1   :  { %v564_v9 = vld [vmem:[#allocation3] sm:$0x1] }
  0xc2   :  { %565 = vst.msk [vmem:[#allocation11] sm:$0x1] %vm56_vm0, %v564_v9 }
 0x139   :  { %v75_v19 = vpop.permute.xlu0 %74 }
 0x13a   :  { %v80_v20 = vrot.slane %v75_v19, %v79_v18 }
 0x13c   :  { %v81_v21 = vsub.f32 %v61_v1, %v80_v20 }
 0x13e   :  { %v82_v22 = vmul.f32 -2.0, %v81_v21 }
 0x140   :  { %v83_v23 = vmul.f32 1.442695, %v82_v22 }
 0x142   :  { %666 = vpow2.f32 %v83_v23 }
 0x143   :  { %668 = vpow2.f32 %v70_v29 }
 0x14c   :  { %v667_v24 = vpop.eup %666 }
 0x14d   :  { %v87_v26 = vsel %vm63_vm1, %v667_v24, 0.0  ;;  %v107_v27 = vsel %vm105_vm3, %v667_v24, 0  ;;  %v669_v34 = vpop.eup %668 }
 0x14e   :  { %88 = vadd.xlane.f32.xlu1 %v87_v26  ;;  %v175_v28 = vand.u32 4294901760, %v107_v27 }
 0x150   :  { %v176_v30 = vsub.f32 %v107_v27, %v175_v28  ;;  %633 = vmatmul.mubr.f32.vlgmr.msra.gmra.mrb[0].mxu1 %v175_v28 }
 0x151   :  { %641 = vmatpush3.msra.mxu1 %v110_v11  ;;  %642 = vmatprep.mubr.msk.f32.mxu1 %vm793_vm2, %v792_v4 }
 0x152   :  { %v177_v31 = vand.u32 4294901760, %v176_v30  ;;  %650 = vmatprep.subr.mxu1 %v792_v4 }
 0x154   :  { %643 = vmatmul.mubr.f32.vlgmr.msra.gmra.mrb[2].mxu1 %v177_v31  ;;  %v178_v32 = vsub.f32 %v176_v30, %v177_v31 }
 0x155   :  { %651 = vmatpush3.msra.mxu1 %v110_v11  ;;  %652 = vmatprep.mubr.msk.f32.mxu1 %vm793_vm2, %v792_v4 }
 0x156   :  { %v179_v33 = vand.u32 4294901760, %v178_v32 }
 0x158   :  { %628 = vmatmul.mubr.f32.vlgmr.msra.gmra.mrb[0].mxu0 %v179_v33  ;;  %653 = vmatmul.mubr.f32.vlgmr.msra.gmra.mrb[4].mxu1 %v175_v28 }
 0x159   :  { %636 = vmatpush3.msra.mxu0 %v187_v12  ;;  %637 = vmatprep.mubr.msk.f32.mxu0 %vm793_vm2, %v792_v4 }
 0x15a   :  { %645 = vmatprep.subr.mxu0 %v792_v4 }
 0x15c   :  { %638 = vmatmul.mubr.f32.vlgmr.msra.gmra.mrb[2].mxu0 %v176_v30 }
 0x15d   :  { %646 = vmatpush3.msra.mxu0 %v188_v13  ;;  %647 = vmatprep.mubr.msk.f32.mxu0 %vm793_vm2, %v792_v4 }
 0x15f   :  { %97 = vperm.xlu1 %665, %v669_v34  }
 0x160   :  { %648 = vmatmul.mubr.f32.vlgmr.msra.gmra.mrb[4].mxu0 %v175_v28 }
 0x161   :  { %725 = shalt.err (!%p722_p6)
}
 0x162   :  { %s726_s18 = scalar_lea.hbm %s923_s3, 16 }
 0x163   :  { %p727_p7 = scmp.ne.s32.totalorder %s923_s3, %s726_s18  ;;  %p730_p8 = scmp.lt.u32.totalorder %s726_s18, %s923_s3 }
 0x165   :  { %p732_p9 = pnand %p730_p8, %p727_p7 }
 0x167   :  { %735 = shalt.err (!%p732_p9)
}
 0x168   :  { %587 = dma.vmem_to_hbm [thread:$0]  %s585_s13, 16, %s923_s3, [#allocation12]   ;;  %v85_v35 = vld [vmem:[#allocation4] sm:$0x1] }
 0x169   :  { %v86_v36 = vmul.f32 %v669_v34, %v85_v35  ;;  %s795_s25 = smov [#allocation13]  }
 0x16a   :  { %s594_s26 = sshll.u32 %s795_s25, 4  ;;  %s595_s26 = int_to_ptr.vmem [resolvable:$true] %s594_s26 }
 0x16b   :  { %s736_s27 = scalar_lea.vmem %s595_s26, 16  ;;  %s740_s28 = scalar_lea.vmem %s595_s26, 32 }
 0x16c   :  { %p737_p10 = scmp.ne.s32.totalorder %s595_s26, %s736_s27  ;;  %p741_p11 = scmp.lt.s32.totalorder %s595_s26, %s595_s26 }
 0x16d   :  { %p742_p12 = scmp.lt.s32.totalorder %s740_s28, %s736_s27 }
 0x16f   :  { %p743_p13 = por %p742_p12, %p741_p11 }
 0x171   :  { %p744_p0 = pnand %p743_p13, %p737_p10 }
 0x1db   :  { %v89_v37 = vpop.xlane.xlu1 %88 }
 0x1dc   :  { %v90_v38 = vadd.f32 %v89_v37, %v86_v36 }
 0x1de   :  { %92 = vst.msk [vmem:[#allocation4] sm:$0x1] %vm56_vm0, %v90_v38 }
 0x1e5   :  { %v566_v39 = vld [vmem:[#allocation4] sm:$0x1] }
 0x1e6   :  { %567 = vst.msk [vmem:[#allocation13] sm:$0x1] %vm56_vm0, %v566_v39 }
 0x1e7   :  { %747 = shalt.err (!%p744_p0)
}
 0x1e8   :  { %s748_s30 = scalar_lea.hbm %s924_s4, 16 }
 0x1e9   :  { %p749_p1 = scmp.ne.s32.totalorder %s924_s4, %s748_s30  ;;  %p752_p2 = scmp.lt.u32.totalorder %s748_s30, %s924_s4 }
 0x1eb   :  { %p754_p3 = pnand %p752_p2, %p749_p1 }
 0x1ed   :  { %757 = shalt.err (!%p754_p3)
}
 0x1ee   :  { %597 = dma.vmem_to_hbm [thread:$0]  %s595_s26, 16, %s924_s4, [#allocation12]   ;;  %v98_v49 = vpop.permute.xlu1 %97  ;;  %v94_v55 = vld [vmem:[#allocation2] sm:$0x1] }
 0x1ef   :  { %v103_v53 = vrot.slane %v98_v49, %v79_v18  ;;  %s796_s4 = smov [#allocation10]  }
 0x1f0   :  { %s574_s11 = sshll.u32 %s796_s4, 4  ;;  %s575_s11 = int_to_ptr.vmem [resolvable:$true] %s574_s11 }
 0x1f1   :  { %v104_v59 = vmul.f32 %v103_v53, %v94_v55  ;;  %s758_s0 = scalar_lea.vmem %s575_s11, 16  ;;  %s762_s12 = scalar_lea.vmem %s575_s11, 32 }
 0x1f2   :  { %p759_p4 = scmp.ne.s32.totalorder %s575_s11, %s758_s0  ;;  %p763_p5 = scmp.lt.s32.totalorder %s575_s11, %s575_s11 }
 0x1f3   :  { %p764_p6 = scmp.lt.s32.totalorder %s762_s12, %s758_s0 }
 0x1f5   :  { %p765_p7 = por %p764_p6, %p763_p5 }
 0x1f7   :  { %p766_p8 = pnand %p765_p7, %p759_p4 }
 0x223   :  { %v257_v40 = vpop.f32.mrb[0].mxu1 }
 0x224   :  { %v634_v41 = vpop.f32.mrb[1].mxu1 }
 0x227   :  { %v405_v42 = vpop.f32.mrb[2].mxu1 }
 0x228   :  { %v644_v43 = vpop.f32.mrb[3].mxu1 }
 0x22b   :  { %v181_v44 = vpop.f32.mrb[0].mxu0  ;;  %v551_v45 = vpop.f32.mrb[4].mxu1 }
 0x22c   :  { %v258_v46 = vadd.f32 %v257_v40, %v181_v44  ;;  %v629_v47 = vpop.f32.mrb[1].mxu0  ;;  %v654_v48 = vpop.f32.mrb[5].mxu1 }
 0x22f   :  { %v331_v50 = vpop.f32.mrb[2].mxu0 }
 0x230   :  { %v332_v51 = vadd.f32 %v331_v50, %v258_v46  ;;  %v639_v52 = vpop.f32.mrb[3].mxu0 }
 0x232   :  { %v406_v54 = vadd.f32 %v405_v42, %v332_v51 }
 0x233   :  { %v479_v56 = vpop.f32.mrb[4].mxu0 }
 0x234   :  { %v480_v57 = vadd.f32 %v479_v56, %v406_v54  ;;  %v649_v58 = vpop.f32.mrb[5].mxu0 }
 0x236   :  { %v552_v60 = vadd.f32 %v551_v45, %v480_v57 }
 0x238   :  { %v555_v61 = vadd.f32 %v552_v60, %v104_v59 }
 0x23a   :  { %557 = vst.msk [vmem:[#allocation2] sm:$0x1] %vm59_vm4, %v555_v61 }
 0x241   :  { %v562_v62 = vld [vmem:[#allocation2] sm:$0x1] }
 0x242   :  { %563 = vst.msk [vmem:[#allocation10] sm:$0x1] %vm59_vm4, %v562_v62 }
 0x243   :  { %769 = shalt.err (!%p766_p8)
}
 0x244   :  { %s770_s14 = scalar_lea.hbm %s922_s2, 16 }
 0x245   :  { %p771_p9 = scmp.ne.s32.totalorder %s922_s2, %s770_s14  ;;  %p774_p10 = scmp.lt.u32.totalorder %s770_s14, %s922_s2 }
 0x247   :  { %p776_p11 = pnand %p774_p10, %p771_p9 }
 0x249   :  { %779 = shalt.err (!%p776_p11)
}
 0x24a   :  { %577 = dma.vmem_to_hbm [thread:$0]  %s575_s11, 16, %s922_s2, [#allocation7]  }
 0x24b   :  { %784 = dma.done.wait [#allocation7], 16  }
 0x24c   :  { %785 = vsyncadd [#allocation7], 4294967280 }
 0x24d   :  { %786 = dma.done.wait [#allocation12], 32  }
 0x24e   :  { %787 = vsyncadd [#allocation12], 4294967264 }
 0x24f   :  { %607 = vsyncpa [#allocation6], 1 }
 0x250   :  { %608 = vsyncpa [#allocation9], 1 }
 0x251   :  { %609 = vsyncpa [#allocation7], 1 }
 0x252   :  { %610 = vsyncpa [#allocation12], 1 }

</bundles_post_ra>
